<compile_context>
chip_gen: v6e
topology: v6e:2x2x1
jax: 0.10.0
libtpu: 0.0.40
codegen_flags: <defaults>
</compile_context>

<pallas_src>
import jax
import jax.numpy as jnp
from jax import lax
from jax.experimental import pallas as pl
from jax.experimental.pallas import tpu as pltpu


# ---------------------------------------------------------------------------
# Kernels
# ---------------------------------------------------------------------------

def _scale_predictor_small_kernel(x_ref, w_ref, b_ref, o_ref):
    """Single-block path for tiny / unaligned batch sizes.

    x_ref: (B, nz) VMEM, w_ref: (1, nz) VMEM, b_ref: (1, 1) SMEM (bias + 1),
    o_ref: (B, 1) VMEM.
    Linear(nz,1) is a VPU multiply + lane reduce (an N=1 MXU matmul would be
    lane-sparse pure drain at this size).
    """
    x = x_ref[...].astype(jnp.float32)
    w = w_ref[...].astype(jnp.float32)            # broadcasts over B
    y = jnp.sum(x * w, axis=-1, keepdims=True)    # (B, 1), f32 accumulate
    y = y + b_ref[0, 0]                           # bias already includes +1
    o_ref[...] = (jnp.maximum(y, 0.0) + 1e-12).astype(o_ref.dtype)


def _scale_predictor_tiled_kernel(x_ref, w_ref, b_ref, o_ref):
    """Batch-tiled, lane-dense path.

    x_ref: (TB, nz) VMEM, w_ref: (1, nz) VMEM, b_ref: (1, 1) SMEM (bias + 1),
    o_ref: (1, TB) VMEM  -- batch on the lane axis => unmasked dense stores.
    """
    # (1, nz) x (TB, nz) contracted over nz -> (1, TB); f32 accumulation.
    y = lax.dot_general(
        w_ref[...], x_ref[...],
        dimension_numbers=(((1,), (1,)), ((), ())),
        preferred_element_type=jnp.float32)       # (1, TB)
    y = y + b_ref[0, 0]                           # bias already includes +1
    o_ref[...] = (jnp.maximum(y, 0.0) + 1e-12).astype(o_ref.dtype)


# ---------------------------------------------------------------------------
# Wrapper
# ---------------------------------------------------------------------------

def scale_predictor_forward(feat, w, b, *, block_b=512):
    """feat: (B, nz); w: (1, nz) nn.Linear weight; b: (1, 1) nn.Linear bias.

    Returns (B, 1) float32, matching:  relu(feat @ w.T + b + 1) + 1e-12.
    """
    B, nz = feat.shape
    # Fold the "+ 1" into the bias on the host (one scalar add, done once).
    b_fused = (b.reshape(1, 1) + 1.0).astype(jnp.float32)

    # Pick a batch tile: multiple of 128 (lane-dense output) that divides B.
    tb = None
    for cand in (block_b, 1024, 512, 256, 128):
        if cand is not None and cand >= 128 and cand % 128 == 0 and B % cand == 0:
            tb = cand
            break

    if tb is not None:
        # ---- batched, pipelined, lane-dense path -------------------------
        n_tiles = B // tb
        out = pl.pallas_call(
            _scale_predictor_tiled_kernel,
            out_shape=jax.ShapeDtypeStruct((1, B), jnp.float32),
            grid=(n_tiles,),
            in_specs=[
                pl.BlockSpec((tb, nz), lambda i: (i, 0)),          # feat tile
                pl.BlockSpec((1, nz), lambda i: (0, 0)),           # weight row
                pl.BlockSpec(memory_space=pltpu.MemorySpace.SMEM),  # bias+1
            ],
            out_specs=pl.BlockSpec((1, tb), lambda i: (0, i)),     # lane-dense
            compiler_params=pltpu.CompilerParams(
                dimension_semantics=("parallel",)),                # v7x: 2 TCs
        )(feat, w, b_fused)
        # Layout plumbing only: (1, B) -> (B, 1).
        return out.reshape(B, 1)

    # ---- tiny / unaligned-B path: one block, no grid, no loop overhead ----
    return pl.pallas_call(
        _scale_predictor_small_kernel,
        out_shape=jax.ShapeDtypeStruct((B, 1), jnp.float32),
        in_specs=[
            pl.BlockSpec(memory_space=pltpu.MemorySpace.VMEM),      # feat
            pl.BlockSpec(memory_space=pltpu.MemorySpace.VMEM),      # weight
            pl.BlockSpec(memory_space=pltpu.MemorySpace.SMEM),      # bias+1
        ],
        out_specs=pl.BlockSpec(memory_space=pltpu.MemorySpace.VMEM),
    )(feat, w, b_fused)


# ---------------------------------------------------------------------------
# Deterministic synthetic inputs + pure-JAX reference check
# ---------------------------------------------------------------------------

if __name__ == "__main__":
    nz = 32
    key = jax.random.PRNGKey(0)
    k_feat, k_w, k_b, k_feat2 = jax.random.split(key, 4)

    w = 0.05 * jax.random.normal(k_w, (1, nz), jnp.float32)   # nn.Linear weight
    b = 0.05 * jax.random.normal(k_b, (1, 1), jnp.float32)    # nn.Linear bias

    def ref_fn(f):
        # Pure-JAX reference of the PyTorch forward.
        return jnp.maximum(f @ w.T + b + 1.0, 0.0) + 1e-12

    # 1) Module-consistent tiny shape (B=2): single-block, no-grid path.
    feat_small = jax.random.normal(k_feat, (2, nz), jnp.float32)
    out_small = jax.block_until_ready(scale_predictor_forward(feat_small, w, b))
    assert out_small.shape == (2, 1), out_small.shape
    assert out_small.dtype == jnp.float32
    assert jnp.allclose(out_small, ref_fn(feat_small), atol=1e-5, rtol=1e-5)

    # 2) Batched shape (B=256): tiled, lane-dense, "parallel" grid path.
    feat_big = jax.random.normal(k_feat2, (256, nz), jnp.float32)
    out_big = jax.block_until_ready(
        scale_predictor_forward(feat_big, w, b, block_b=128))
    assert out_big.shape == (256, 1), out_big.shape
    assert out_big.dtype == jnp.float32
    assert jnp.allclose(out_big, ref_fn(feat_big), atol=1e-5, rtol=1e-5)

    print("KERNEL_OK")
</pallas_src>

<mosaic_0001>
module attributes {stable_mosaic.version = 11 : i64} {
  func.func @_scale_predictor_small_kernel(%arg0: memref<2x32xf32, #tpu.memory_space<vmem>>, %arg1: memref<1x32xf32, #tpu.memory_space<vmem>>, %arg2: memref<1x1xf32, #tpu.memory_space<smem>>, %arg3: memref<2x1xf32, #tpu.memory_space<vmem>>) attributes {dimension_semantics = [], scalar_prefetch = 0 : i64, scratch_operands = 0 : i64, tpu.core_type = #tpu.core_type<tc>} {
    %c0 = arith.constant 0 : index
    %c0_0 = arith.constant 0 : index
    %0 = vector.load %arg0[%c0, %c0_0] : memref<2x32xf32, #tpu.memory_space<vmem>>, vector<2x32xf32>
    %c0_1 = arith.constant 0 : index
    %c0_2 = arith.constant 0 : index
    %1 = vector.load %arg1[%c0_1, %c0_2] : memref<1x32xf32, #tpu.memory_space<vmem>>, vector<1x32xf32>
    %2 = vector.broadcast %1 : vector<1x32xf32> to vector<2x32xf32>
    %3 = arith.mulf %0, %2 : vector<2x32xf32>
    %cst = arith.constant dense<0.000000e+00> : vector<2xf32>
    %4 = vector.multi_reduction <add>, %3, %cst [1] : vector<2x32xf32> to vector<2xf32>
    %5 = vector.shape_cast %4 : vector<2xf32> to vector<2x1xf32>
    %c0_3 = arith.constant 0 : index
    %c0_4 = arith.constant 0 : index
    %6 = memref.load %arg2[%c0_3, %c0_4] : memref<1x1xf32, #tpu.memory_space<smem>>
    %7 = vector.broadcast %6 : f32 to vector<2x1xf32>
    %8 = arith.addf %5, %7 : vector<2x1xf32>
    %cst_5 = arith.constant 0.000000e+00 : f32
    %9 = vector.broadcast %cst_5 : f32 to vector<2x1xf32>
    %10 = arith.maximumf %8, %9 : vector<2x1xf32>
    %cst_6 = arith.constant 9.99999996E-13 : f32
    %11 = vector.broadcast %cst_6 : f32 to vector<2x1xf32>
    %12 = arith.addf %10, %11 : vector<2x1xf32>
    %c0_7 = arith.constant 0 : index
    %c0_8 = arith.constant 0 : index
    %13 = vector.load %arg3[%c0_7, %c0_8] : memref<2x1xf32, #tpu.memory_space<vmem>>, vector<2x1xf32>
    tpu.vector_store %arg3[%c0_7, %c0_8], %12 {strides = array<i32>} : memref<2x1xf32, #tpu.memory_space<vmem>>, vector<2x1xf32>,
    return
  }
}

</mosaic_0001>

<bundles_post_ra>
// kernel: tpu_custom_call.1
= control target key start
LH: loop header
LB: loop body
LE: loop exit
PB: predicated region body
PF: predicated region fallthrough
CT: control target
= control target key end

     0   :  { %vm24_vm0 = vcmask 254976   ;;  %vm33_vm1 = vcmask 1024   ;;  %s72_s0 = inlined_call_operand.vmem [shape: f32[2,32], index: 0, kind: input, shape index: {}]   ;;  %s73_s1 = inlined_call_operand.vmem [shape: f32[1,32], index: 1, kind: input, shape index: {}]   ;;  %s74_s2 = inlined_call_operand.<no memory space> [shape: f32[1,1], index: 2, kind: input, shape index: {}]   ;;  %s75_s3 = inlined_call_operand.vmem [shape: f32[2,1], index: 3, kind: output, shape index: {}]  }
   0x1   :  { %v15_v0 = vld [vmem:[%s72_s0] sm:$0x3]  ;;  %v29_v4 = vstv %s74_s2 }
   0x2   :  { %v39_v1 = vld [vmem:[%s73_s1] ss:$0 sm:$0xff] }
   0x3   :  { %v23_v2 = vmul.f32 %v39_v1, %v15_v0 }
   0x5   :  { %v25_v3 = vsel %vm24_vm0, %v23_v2, 0.0 }
   0x6   :  { %26 = vadd.xlane.f32.xlu0 %v25_v3 }
  0x8f   :  { %v27_v5 = vpop.xlane.xlu0 %26 }
  0x90   :  { %v30_v6 = vadd.f32 %v29_v4, %v27_v5 }
  0x92   :  { %v31_v7 = vmax.f32 %v30_v6, 0.0 }
  0x94   :  { %v32_v8 = vadd.f32 1e-12, %v31_v7 }
  0x96   :  { %34 = vst.msk [vmem:[%s75_s3] sm:$0x3] %vm33_vm1, %v32_v8 }

</bundles_post_ra>
